<compile_context>
chip_gen: v5e
topology: v5e:2x2
jax: 0.10.0
libtpu: 0.0.40
codegen_flags: <defaults>
</compile_context>

<pallas_src>
import functools

import jax
import jax.numpy as jnp
from jax.experimental import pallas as pl
from jax.experimental.pallas import tpu as pltpu


def _round_up(v, m):
    return (v + m - 1) // m * m


def _patch_proj_kernel(p_ref, w_ref, b_ref, o_ref):
    """o = p @ w + b   (p: [TM, K] bf16, w: [K, E] bf16 resident, b: [1, E] f32)."""
    acc = jnp.dot(p_ref[...], w_ref[...], preferred_element_type=jnp.float32)
    o_ref[...] = (acc + b_ref[...]).astype(o_ref.dtype)


def patch_embedding_forward(x, weight, bias, *, patch_size, stride, block_m=512):
    """Forward pass of PatchEmbedding.

    x:      (B, C, H, W)    NCHW
    weight: (E, C, ph, pw)  Conv2d weight (PyTorch layout)
    bias:   (E,)
    returns (B, num_patches, E)  ==  conv(x).flatten(2).transpose(1, 2)
    """
    B, C, H, W = x.shape
    E, Cw, ph, pw = weight.shape
    assert C == Cw
    assert ph == patch_size and pw == patch_size
    # TODO(synk): only non-overlapping patches (stride == patch_size, the module
    # default) are supported; overlapping strides need an explicit im2col gather.
    assert stride == patch_size, "only stride == patch_size supported"
    assert H % ph == 0 and W % pw == 0

    gh, gw = H // ph, W // pw
    n_patches = gh * gw
    K = C * ph * pw
    M = B * n_patches

    # ---- im2col (XLA glue), in bf16 so the extra HBM traffic is halved ------
    # Feature order is (c, ph, pw) to match PyTorch's Conv2d weight flattening.
    xb = x.astype(jnp.bfloat16)
    patches = xb.reshape(B, C, gh, ph, gw, pw)
    patches = jnp.transpose(patches, (0, 2, 4, 1, 3, 5))       # (B,gh,gw,C,ph,pw)
    patches = patches.reshape(M, K)                            # (M, K) bf16

    # ---- weight / bias: bf16 matmul operand, lane-dense (padded) embed dim --
    e_pad = max(_round_up(E, 128), 128)
    w_mat = weight.reshape(E, K).T.astype(jnp.bfloat16)        # (K, E)
    b_vec = bias.astype(jnp.float32)
    if e_pad != E:
        w_mat = jnp.pad(w_mat, ((0, 0), (0, e_pad - E)))
        b_vec = jnp.pad(b_vec, (0, e_pad - E))
    b_mat = b_vec.reshape(1, e_pad)

    # ---- tiled projection matmul on the MXU ---------------------------------
    tm = M if M <= block_m else block_m          # full array, or a multiple of 8
    grid = (pl.cdiv(M, tm),)

    out_dtype = x.dtype
    out_itemsize = jnp.dtype(out_dtype).itemsize
    bytes_accessed = (M * K * 2) + (K * e_pad * 2) + (e_pad * 4) + (M * e_pad * out_itemsize)

    out = pl.pallas_call(
        _patch_proj_kernel,
        out_shape=jax.ShapeDtypeStruct((M, e_pad), out_dtype),
        grid=grid,
        in_specs=[
            pl.BlockSpec((tm, K), lambda i: (i, 0)),        # patches: streamed over M
            pl.BlockSpec((K, e_pad), lambda i: (0, 0)),     # weight: VMEM-resident
            pl.BlockSpec((1, e_pad), lambda i: (0, 0)),     # bias:   VMEM-resident
        ],
        out_specs=pl.BlockSpec((tm, e_pad), lambda i: (i, 0)),
        compiler_params=pltpu.CompilerParams(
            dimension_semantics=("parallel",)),             # v7x: shard M over both TCs
        cost_estimate=pl.CostEstimate(
            flops=2 * M * K * e_pad,
            transcendentals=0,
            bytes_accessed=bytes_accessed),
    )(patches, w_mat, b_mat)

    if e_pad != E:
        out = out[:, :E]
    # (B*num_patches, E) -> (B, num_patches, E)  == flatten(2).transpose(1, 2)
    return out.reshape(B, n_patches, E)


def reference_forward_f32(x, weight, bias, *, patch_size, stride):
    """Pure-JAX f32 reference: Conv2d(NCHW) + flatten(2).transpose(1, 2)."""
    y = jax.lax.conv_general_dilated(
        x, weight,
        window_strides=(stride, stride),
        padding="VALID",
        dimension_numbers=("NCHW", "OIHW", "NCHW"),
    ) + bias.reshape(1, -1, 1, 1)
    B, E, gh, gw = y.shape
    return jnp.transpose(y.reshape(B, E, gh * gw), (0, 2, 1))


def reference_forward_bf16(x, weight, bias, *, patch_size):
    """Reference with the same bf16 im2col/matmul casting as the kernel path."""
    B, C, H, W = x.shape
    E = weight.shape[0]
    gh, gw = H // patch_size, W // patch_size
    K = C * patch_size * patch_size
    p = x.astype(jnp.bfloat16).reshape(B, C, gh, patch_size, gw, patch_size)
    p = jnp.transpose(p, (0, 2, 4, 1, 3, 5)).reshape(B * gh * gw, K)
    w = weight.reshape(E, K).T.astype(jnp.bfloat16)
    y = jnp.dot(p, w, preferred_element_type=jnp.float32) + bias.astype(jnp.float32)
    return y.reshape(B, gh * gw, E).astype(x.dtype)


if __name__ == "__main__":
    # Small, module-consistent shapes: img 16x16, patch 8, 4 channels, embed 32.
    B, C, IMG, PATCH, STRIDE, EMBED = 2, 4, 16, 8, 8, 32

    key = jax.random.PRNGKey(0)
    kx, kw, kb = jax.random.split(key, 3)

    x = jax.random.normal(kx, (B, C, IMG, IMG), dtype=jnp.float32)
    # Deterministic Conv2d parameters (synthetic init, not a checkpoint).
    fan_in = C * PATCH * PATCH
    bound = 1.0 / (fan_in ** 0.5)
    weight = jax.random.uniform(kw, (EMBED, C, PATCH, PATCH),
                                minval=-bound, maxval=bound, dtype=jnp.float32)
    bias = jax.random.uniform(kb, (EMBED,), minval=-bound, maxval=bound,
                              dtype=jnp.float32)

    fwd = jax.jit(functools.partial(patch_embedding_forward,
                                    patch_size=PATCH, stride=STRIDE))
    out = jax.block_until_ready(fwd(x, weight, bias))

    n_patches = (IMG // PATCH) ** 2
    assert out.shape == (B, n_patches, EMBED), out.shape

    # Tight check against a reference using the same bf16 casting.
    ref_b = reference_forward_bf16(x, weight, bias, patch_size=PATCH)
    assert jnp.allclose(out, ref_b, atol=1e-3, rtol=1e-3), float(
        jnp.max(jnp.abs(out - ref_b)))

    # Loose check against the full-f32 conv reference (bf16 MXU rounding).
    ref_f = reference_forward_f32(x, weight, bias, patch_size=PATCH, stride=STRIDE)
    assert jnp.allclose(out, ref_f, atol=5e-2, rtol=5e-2), float(
        jnp.max(jnp.abs(out - ref_f)))

    print("KERNEL_OK")
</pallas_src>

<mosaic_0001>
module attributes {stable_mosaic.version = 11 : i64} {
  func.func @_patch_proj_kernel(%arg0: i32, %arg1: memref<8x256xbf16, #tpu.memory_space<vmem>>, %arg2: memref<256x128xbf16, #tpu.memory_space<vmem>>, %arg3: memref<1x128xf32, #tpu.memory_space<vmem>>, %arg4: memref<8x128xf32, #tpu.memory_space<vmem>>) attributes {dimension_semantics = [#tpu.dimension_semantics<parallel>], iteration_bounds = array<i64: 1>, scalar_prefetch = 0 : i64, scratch_operands = 0 : i64, tpu.core_type = #tpu.core_type<tc>, window_params = [{transform_indices = @transform_0, window_bounds = array<i64: 8, 256>}, {pipeline_mode = #tpu.pipeline_mode<synchronous>, transform_indices = @transform_1, window_bounds = array<i64: 256, 128>}, {pipeline_mode = #tpu.pipeline_mode<synchronous>, transform_indices = @transform_2, window_bounds = array<i64: 1, 128>}, {transform_indices = @transform_3, window_bounds = array<i64: 8, 128>}]} {
    %c0 = arith.constant 0 : index
    %c0_0 = arith.constant 0 : index
    %0 = vector.load %arg1[%c0, %c0_0] : memref<8x256xbf16, #tpu.memory_space<vmem>>, vector<8x256xbf16>
    %c0_1 = arith.constant 0 : index
    %c0_2 = arith.constant 0 : index
    %1 = vector.load %arg2[%c0_1, %c0_2] : memref<256x128xbf16, #tpu.memory_space<vmem>>, vector<256x128xbf16>
    %cst = arith.constant dense<0.000000e+00> : vector<8x128xf32>
    %2 = tpu.matmul %0, %1, %cst {dimension_numbers = #tpu.dot_dimension_numbers<[1], [0], [0], [1], [0, 0, 1, 1], [], []>} : vector<8x256xbf16>, vector<256x128xbf16>, vector<8x128xf32> -> vector<8x128xf32>
    %c0_3 = arith.constant 0 : index
    %c0_4 = arith.constant 0 : index
    %3 = vector.load %arg3[%c0_3, %c0_4] : memref<1x128xf32, #tpu.memory_space<vmem>>, vector<1x128xf32>
    %4 = vector.broadcast %3 : vector<1x128xf32> to vector<8x128xf32>
    %5 = arith.addf %2, %4 : vector<8x128xf32>
    %c0_5 = arith.constant 0 : index
    %c0_6 = arith.constant 0 : index
    %6 = vector.load %arg4[%c0_5, %c0_6] : memref<8x128xf32, #tpu.memory_space<vmem>>, vector<8x128xf32>
    tpu.vector_store %arg4[%c0_5, %c0_6], %5 {strides = array<i32>} : memref<8x128xf32, #tpu.memory_space<vmem>>, vector<8x128xf32>,
    return
  }
  func.func @transform_0(%arg0: i32) -> (i32, i32) {
    %c0_i32 = arith.constant 0 : i32
    %c0_i32_0 = arith.constant 0 : i32
    return %arg0, %c0_i32 : i32, i32
  }
  func.func @transform_1(%arg0: i32) -> (i32, i32) {
    %c0_i32 = arith.constant 0 : i32
    %c0_i32_0 = arith.constant 0 : i32
    %c0_i32_1 = arith.constant 0 : i32
    return %c0_i32, %c0_i32_0 : i32, i32
  }
  func.func @transform_2(%arg0: i32) -> (i32, i32) {
    %c0_i32 = arith.constant 0 : i32
    %c0_i32_0 = arith.constant 0 : i32
    %c0_i32_1 = arith.constant 0 : i32
    return %c0_i32, %c0_i32_0 : i32, i32
  }
  func.func @transform_3(%arg0: i32) -> (i32, i32) {
    %c0_i32 = arith.constant 0 : i32
    %c0_i32_0 = arith.constant 0 : i32
    return %arg0, %c0_i32 : i32, i32
  }
}

</mosaic_0001>

<bundles_post_ra>
// kernel: patch_embedding_forward.1
= control target key start
LH: loop header
LB: loop body
LE: loop exit
PB: predicated region body
PF: predicated region fallthrough
CT: control target
= control target key end

     0   :  { %s384_s0 = inlined_call_operand.vmem [shape: bf16[8,256], index: 0, kind: input, shape index: {}]   ;;  %s385_s1 = inlined_call_operand.vmem [shape: bf16[256,128], index: 1, kind: input, shape index: {}]   ;;  %s386_s2 = inlined_call_operand.vmem [shape: f32[1,128], index: 2, kind: input, shape index: {}]   ;;  %s387_s3 = inlined_call_operand.hbm [shape: f32[8,128], index: 3, kind: output, shape index: {}]  }
   0x1   :  { %v269_v0 = vld [vmem:[%s385_s1 + $0x38] sm:$0xff]  ;;  %v268_v2 = vld [vmem:[%s385_s1 + $0x30] sm:$0xff]  ;;  %v267_v4 = vld [vmem:[%s385_s1 + $0x28] sm:$0xff] }
   0x2   :  { %v277_v1 = vld [vmem:[%s385_s1 + $0x78] sm:$0xff]  ;;  %155 = vmatpush.bf16.msra.mxu0 %v269_v0  ;;  %v276_v3 = vld [vmem:[%s385_s1 + $0x70] sm:$0xff]  ;;  %v275_v5 = vld [vmem:[%s385_s1 + $0x68] sm:$0xff] }
   0x3   :  { %168 = vmatpush.bf16.msra.mxu1 %v277_v1 }
   0x6   :  { %156 = vmatpush.bf16.msra.mxu0 %v268_v2 }
   0x7   :  { %169 = vmatpush.bf16.msra.mxu1 %v276_v3 }
   0x8   :  { %8 = vsyncpa [#allocation3], 0  ;;  %v266_v6 = vld [vmem:[%s385_s1 + $0x20] sm:$0xff]  ;;  %v265_v8 = vld [vmem:[%s385_s1 + $0x18] sm:$0xff]  ;;  %s306_s20 = smov [#allocation2]   ;;  %s189_s24 = sshll.u32 %s387_s3, 4  ;;  %s190_s24 = int_to_ptr.hbm [resolvable:$true] %s189_s24 }
   0x9   :  { %v274_v7 = vld [vmem:[%s385_s1 + $0x60] sm:$0xff]  ;;  %v273_v9 = vld [vmem:[%s385_s1 + $0x58] sm:$0xff]  ;;  %v264_v10 = vld [vmem:[%s385_s1 + $0x10] sm:$0xff]  ;;  %s187_s21 = sshll.u32 %s306_s20, 4  ;;  %s188_s21 = int_to_ptr.vmem [resolvable:$true] %s187_s21 }
   0xa   :  { %157 = vmatpush.bf16.msra.mxu0 %v267_v4  ;;  %v272_v11 = vld [vmem:[%s385_s1 + $0x50] sm:$0xff]  ;;  %v263_v12 = vld [vmem:[%s385_s1 + $0x8] sm:$0xff]  ;;  %v15_v14 = vld [vmem:[%s384_s0] sm:$0xff] }
   0xb   :  { %170 = vmatpush.bf16.msra.mxu1 %v275_v5  ;;  %v271_v13 = vld [vmem:[%s385_s1 + $0x48] sm:$0xff]  ;;  %v53_v15 = vunpack.c.l.b16 %v15_v14  ;;  %v54_v16 = vunpack.c.h.b16 %v15_v14  ;;  %v262_v17 = vld [vmem:[%s385_s1] sm:$0xff] }
   0xc   :  { %v270_v18 = vld [vmem:[%s385_s1 + $0x40] sm:$0xff] }
   0xd   :  { %v55_v19 = vpack.c.b16 %v53_v15, %v53_v15  ;;  %v56_v20 = vpack.c.b16 %v54_v16, %v54_v16  ;;  %v279_v21 = vld [vmem:[%s386_s2] ss:$0 sm:$0xff] }
   0xe   :  { %158 = vmatpush.bf16.msra.mxu0 %v266_v6 }
   0xf   :  { %171 = vmatpush.bf16.msra.mxu1 %v274_v7 }
  0x12   :  { %159 = vmatpush.bf16.msra.mxu0 %v265_v8 }
  0x13   :  { %172 = vmatpush.bf16.msra.mxu1 %v273_v9 }
  0x16   :  { %160 = vmatpush.bf16.msra.mxu0 %v264_v10 }
  0x17   :  { %173 = vmatpush.bf16.msra.mxu1 %v272_v11 }
  0x1a   :  { %161 = vmatpush.bf16.msra.mxu0 %v263_v12 }
  0x1b   :  { %174 = vmatpush.bf16.msra.mxu1 %v271_v13 }
  0x1e   :  { %162 = vmatpush.bf16.msra.mxu0 %v262_v17 }
  0x1f   :  { %175 = vmatpush.bf16.msra.mxu1 %v270_v18 }
  0x21   :  { %163 = vmatmul.bf16.vlgmr.msra.gmra.mxu0 %v55_v19 }
  0x22   :  { %176 = vmatmul.bf16.vlgmr.msra.gmra.mxu1 %v56_v20 }
  0x9e   :  { %v164_v22 = vpop.f32.mrf.mxu0 }
  0x9f   :  { %v177_v23 = vpop.f32.mrf.mxu1  ;;  %v165_v24 = vadd.f32 %v279_v21, %v164_v22 }
  0xa1   :  { %v178_v25 = vadd.f32 %v177_v23, %v165_v24 }
  0xa3   :  { %181 = vst [vmem:[#allocation2] sm:$0xff] %v178_v25 }
  0xa4   :  { %192 = dma.vmem_to_hbm [thread:$0]  %s188_s21, 128, %s190_s24, [#allocation3]  }
  0xa6   :  { %v166_v26 = vpop.f32.mrf.mxu0 }
  0xa7   :  { %v179_v27 = vpop.f32.mrf.mxu1 }
  0xa8   :  { %304 = dma.done.wait [#allocation3], 128  }
  0xa9   :  { %305 = vsyncadd [#allocation3], 4294967168 }
  0xaa   :  { %197 = vsyncpa [#allocation3], 1 }

</bundles_post_ra>
